<compile_context>
chip_gen: v5e
topology: v5e:2x2
jax: 0.10.0
libtpu: 0.0.40
codegen_flags: <defaults>
</compile_context>

<pallas_src>
import functools

import jax
import jax.numpy as jnp
import numpy as np
from jax.experimental import pallas as pl
from jax.experimental.pallas import tpu as pltpu


def neat_kernel(weight_ref, a_t_ref, enc_t_ref, dec_t_ref, b_t_ref, x_ref,
                o_ref, acc_ref, *, res_num):
    k = pl.program_id(1)            # position along the K reduction
    cdt = a_t_ref.dtype             # MXU-operand (compute) dtype: bf16 or f32

    @pl.when(k == 0)
    def _():
        acc_ref[...] = jnp.zeros_like(acc_ref)

    # dw tile = relu(weight_tile @ A^T)                        (tile_k, dim) f32
    dw = jnp.maximum(
        jnp.dot(weight_ref[...], a_t_ref[...],
                preferred_element_type=jnp.float32),
        0.0)

    # Encoder half: stash residuals, relu(dw @ enc_i^T).
    residuals = []
    for i in range(res_num):
        residuals.append(dw)
        dw = jnp.maximum(
            jnp.dot(dw.astype(cdt), enc_t_ref[i],
                    preferred_element_type=jnp.float32),
            0.0)

    # Decoder half: relu(dw @ dec_i^T) + residual (reversed order).
    for i in range(res_num):
        dw = jnp.maximum(
            jnp.dot(dw.astype(cdt), dec_t_ref[i],
                    preferred_element_type=jnp.float32),
            0.0)
        dw = dw + residuals[res_num - 1 - i]

    # B^T hoisted out of the K loop: acc(batch, dim) += x_tile @ dw_tile.
    acc_ref[...] += jnp.dot(x_ref[...], dw.astype(cdt),
                            preferred_element_type=jnp.float32)

    # Epilogue (once per K-split): y_partial = acc @ B^T       (batch, out_dim)
    @pl.when(k == pl.num_programs(1) - 1)
    def _():
        o_ref[0] = jnp.dot(acc_ref[...], b_t_ref[...].astype(jnp.float32),
                           preferred_element_type=jnp.float32
                           ).astype(o_ref.dtype)


def _round_up(x, m):
    return ((x + m - 1) // m) * m


def _choose_k_tile(K, out_dim, bytes_per_elem, num_k_splits,
                   *, max_tile=1024, weight_buf_budget=16 << 20):
    """K tile: multiple of 128 (lane dim of x's block), double-buffered weight
    tile fits `weight_buf_budget`, and no larger than one split's share of K."""
    budget_tile = weight_buf_budget // (2 * max(out_dim, 1) * bytes_per_elem)
    tile = min(max_tile, budget_tile, _round_up(pl.cdiv(K, num_k_splits), 128))
    tile = max(128, (tile // 128) * 128)
    return int(tile)


def neat_multilayers_forward(x, weight, A_w, enc_ws, dec_ws, B_w, *,
                             tile_k=None, num_k_splits=1, use_bf16=True):
    """Fused NEAT forward.

    x:      (batch, K)
    weight: (K, out_dim)          frozen base weight fed to the adapter
    A_w:    (dim, out_dim)        torch nn.Linear(out_dim, dim).weight
    enc_ws: (res_num, dim, dim)   stacked nn.Linear(dim, dim).weight
    dec_ws: (res_num, dim, dim)
    B_w:    (out_dim, dim)        torch nn.Linear(dim, out_dim).weight
    num_k_splits: set to 2 on v7x to shard the K reduction across both TCs.
    use_bf16: cast MXU operands to bf16 (f32 accumulation); relu/adds stay f32.
    """
    batch, K = x.shape
    K2, out_dim = weight.shape
    assert K == K2
    res_num, dim, _ = enc_ws.shape

    cdt = jnp.bfloat16 if use_bf16 else jnp.float32
    bytes_c = 2 if use_bf16 else 4

    if tile_k is None:
        tile_k = _choose_k_tile(K, out_dim, bytes_c, num_k_splits)
    tile_k = _round_up(int(tile_k), 128)

    # Zero-pad K so it divides evenly into num_k_splits * tile_k.  Padded weight
    # rows produce dw rows of exactly 0 through the relu chain and the matching
    # x columns are 0, so the result is unchanged.
    K_pad = _round_up(K, tile_k * num_k_splits)
    if K_pad != K:
        x = jnp.pad(x, ((0, 0), (0, K_pad - K)))
        weight = jnp.pad(weight, ((0, K_pad - K), (0, 0)))
    kps = K_pad // (tile_k * num_k_splits)       # grid steps per K split

    # Layout plumbing in plain JAX: pre-transpose + cast MXU operands so every
    # in-kernel matmul is a plain row-major MXU matmul with f32 accumulation.
    a_t = jnp.transpose(A_w).astype(cdt)             # (out_dim, dim)
    enc_t = jnp.swapaxes(enc_ws, 1, 2).astype(cdt)   # (res_num, dim, dim)
    dec_t = jnp.swapaxes(dec_ws, 1, 2).astype(cdt)
    b_t = jnp.transpose(B_w).astype(cdt)             # (dim, out_dim)
    weight = weight.astype(cdt)
    x = x.astype(cdt)

    # Explicit scoped-VMEM limit (v5e default is only 16 MiB; v7x physical 64).
    adapters = (out_dim * dim + 2 * res_num * dim * dim + dim * out_dim) * bytes_c
    est = (2 * tile_k * out_dim * bytes_c          # weight tile (double buffered)
           + 2 * batch * tile_k * bytes_c          # x tile (double buffered)
           + 2 * batch * out_dim * 4               # output block
           + adapters                              # resident adapter weights
           + batch * dim * 4                       # accumulator scratch
           + (res_num + 3) * tile_k * dim * 4)     # dw / residual intermediates
    vmem_limit = int(min(max(est + est // 4 + (2 << 20), 16 << 20), 48 << 20))

    kernel = functools.partial(neat_kernel, res_num=res_num)
    vmem_resident = pl.BlockSpec(memory_space=pltpu.MemorySpace.VMEM)

    partials = pl.pallas_call(
        kernel,
        out_shape=jax.ShapeDtypeStruct((num_k_splits, batch, out_dim),
                                       jnp.float32),
        grid=(num_k_splits, kps),
        in_specs=[
            # Base weight: streamed over K rows, double-buffered HBM -> VMEM.
            pl.BlockSpec((tile_k, out_dim), lambda c, k: (c * kps + k, 0)),
            # Small adapter weights: fully VMEM-resident across the whole grid.
            vmem_resident,   # A^T
            vmem_resident,   # encoders^T
            vmem_resident,   # decoders^T
            vmem_resident,   # B^T
            # x: tiled over its K columns, matching the weight K-tile.
            pl.BlockSpec((batch, tile_k), lambda c, k: (0, c * kps + k)),
        ],
        out_specs=pl.BlockSpec((1, batch, out_dim), lambda c, k: (c, 0, 0)),
        scratch_shapes=[pltpu.VMEM((batch, dim), jnp.float32)],
        compiler_params=pltpu.CompilerParams(
            dimension_semantics=("parallel", "arbitrary"),
            vmem_limit_bytes=vmem_limit),
    )(weight, a_t, enc_t, dec_t, b_t, x)

    # Per-split partials are already x_split @ delta_w; sum over splits
    # (trivial squeeze when num_k_splits == 1).
    return jnp.sum(partials, axis=0)


def neat_reference(x, weight, A_w, enc_ws, dec_ws, B_w):
    """Pure-JAX reference mirroring the PyTorch forward."""
    res_num = enc_ws.shape[0]
    dw = jax.nn.relu(weight @ A_w.T)
    residuals = []
    for i in range(res_num):
        residuals.append(dw)
        dw = jax.nn.relu(dw @ enc_ws[i].T)
    for i in range(res_num):
        dw = jax.nn.relu(dw @ dec_ws[i].T)
        dw = dw + residuals[res_num - 1 - i]
    dw = dw @ B_w.T
    return x @ dw


if __name__ == "__main__":
    # Module hyper-params (small): dim (rank) = 32, out_dim = 128, depth = 4 -> res_num = 1
    dim, out_dim, depth = 32, 128, 4
    res_num = (depth - 2) // 2
    batch, K = 2, 256   # K = rows of the frozen base weight fed to the adapter

    key = jax.random.PRNGKey(0)
    k_x, k_w, k_a, k_enc, k_dec = jax.random.split(key, 5)

    x = jax.random.normal(k_x, (batch, K), dtype=jnp.float32)
    weight = jax.random.normal(k_w, (K, out_dim), dtype=jnp.float32)

    # Parameter init (shapes match the nn.Module __init__).
    A_w = jax.random.normal(k_a, (dim, out_dim), dtype=jnp.float32) * 0.05
    enc_ws = jax.random.normal(k_enc, (res_num, dim, dim), dtype=jnp.float32) * 0.05
    dec_ws = jax.random.normal(k_dec, (res_num, dim, dim), dtype=jnp.float32) * 0.05
    B_w = jnp.zeros((out_dim, dim), dtype=jnp.float32)  # nn.init.zeros_(self.B.weight)
    B_nz = jax.random.normal(jax.random.PRNGKey(7), (out_dim, dim),
                             dtype=jnp.float32) * 0.05

    # 1) Real module init (zero B), f32 path, multi-step K grid (K=256 -> 2 steps).
    y = neat_multilayers_forward(x, weight, A_w, enc_ws, dec_ws, B_w,
                                 tile_k=128, use_bf16=False)
    jax.block_until_ready(y)
    np.testing.assert_allclose(
        np.asarray(y),
        np.asarray(neat_reference(x, weight, A_w, enc_ws, dec_ws, B_w)),
        rtol=1e-5, atol=1e-6)

    # 2) Non-zero B, f32 path, auto tile (exercises the hoisted-B^T epilogue).
    y2 = neat_multilayers_forward(x, weight, A_w, enc_ws, dec_ws, B_nz,
                                  use_bf16=False)
    jax.block_until_ready(y2)
    np.testing.assert_allclose(
        np.asarray(y2),
        np.asarray(neat_reference(x, weight, A_w, enc_ws, dec_ws, B_nz)),
        rtol=1e-4, atol=1e-5)

    # 3) bf16 MXU-operand path + 2-way K split (v7x dual-TC style grid).
    #    Looser tolerance because the operands are rounded to bf16.
    y3 = neat_multilayers_forward(x, weight, A_w, enc_ws, dec_ws, B_nz,
                                  num_k_splits=2, use_bf16=True)
    jax.block_until_ready(y3)
    np.testing.assert_allclose(
        np.asarray(y3),
        np.asarray(neat_reference(x, weight, A_w, enc_ws, dec_ws, B_nz)),
        rtol=5e-2, atol=1e-1)

    print("KERNEL_OK")
</pallas_src>

<mosaic_0001>
module attributes {stable_mosaic.version = 11 : i64} {
  func.func @neat_kernel(%arg0: i32, %arg1: i32, %arg2: memref<128x128xf32, #tpu.memory_space<vmem>>, %arg3: memref<128x32xf32, #tpu.memory_space<vmem>>, %arg4: memref<1x32x32xf32, #tpu.memory_space<vmem>>, %arg5: memref<1x32x32xf32, #tpu.memory_space<vmem>>, %arg6: memref<32x128xf32, #tpu.memory_space<vmem>>, %arg7: memref<2x128xf32, #tpu.memory_space<vmem>>, %arg8: memref<1x2x128xf32, #tpu.memory_space<vmem>>, %arg9: memref<2x32xf32, #tpu.memory_space<vmem>>) attributes {dimension_semantics = [#tpu.dimension_semantics<parallel>, #tpu.dimension_semantics<arbitrary>], iteration_bounds = array<i64: 1, 2>, scalar_prefetch = 0 : i64, scratch_operands = 1 : i64, tpu.core_type = #tpu.core_type<tc>, window_params = [{transform_indices = @transform_0, window_bounds = array<i64: 128, 128>}, {pipeline_mode = #tpu.pipeline_mode<synchronous>, transform_indices = @transform_1, window_bounds = array<i64: 128, 32>}, {pipeline_mode = #tpu.pipeline_mode<synchronous>, transform_indices = @transform_2, window_bounds = array<i64: 1, 32, 32>}, {pipeline_mode = #tpu.pipeline_mode<synchronous>, transform_indices = @transform_3, window_bounds = array<i64: 1, 32, 32>}, {pipeline_mode = #tpu.pipeline_mode<synchronous>, transform_indices = @transform_4, window_bounds = array<i64: 32, 128>}, {transform_indices = @transform_5, window_bounds = array<i64: 2, 128>}, {transform_indices = @transform_6, window_bounds = array<i64: 1, 2, 128>}]} {
    %c0_i32 = arith.constant 0 : i32
    %0 = arith.cmpi eq, %arg1, %c0_i32 : i32
    %1 = arith.extui %0 : i1 to i32
    %c0_i32_0 = arith.constant 0 : i32
    %2 = arith.cmpi ne, %1, %c0_i32_0 : i32
    scf.if %2 {
      %cst_23 = arith.constant 0.000000e+00 : f32
      %27 = vector.broadcast %cst_23 : f32 to vector<2x32xf32>
      %c0_24 = arith.constant 0 : index
      %c0_25 = arith.constant 0 : index
      %28 = vector.load %arg9[%c0_24, %c0_25] : memref<2x32xf32, #tpu.memory_space<vmem>>, vector<2x32xf32>
      tpu.vector_store %arg9[%c0_24, %c0_25], %27 {strides = array<i32>} : memref<2x32xf32, #tpu.memory_space<vmem>>, vector<2x32xf32>,
    } else {
    }
    %c0 = arith.constant 0 : index
    %c0_1 = arith.constant 0 : index
    %3 = vector.load %arg2[%c0, %c0_1] : memref<128x128xf32, #tpu.memory_space<vmem>>, vector<128x128xf32>
    %c0_2 = arith.constant 0 : index
    %c0_3 = arith.constant 0 : index
    %4 = vector.load %arg3[%c0_2, %c0_3] : memref<128x32xf32, #tpu.memory_space<vmem>>, vector<128x32xf32>
    %cst = arith.constant dense<0.000000e+00> : vector<128x32xf32>
    %5 = tpu.matmul %3, %4, %cst {dimension_numbers = #tpu.dot_dimension_numbers<[1], [0], [0], [1], [0, 0, 1, 1], [], []>} : vector<128x128xf32>, vector<128x32xf32>, vector<128x32xf32> -> vector<128x32xf32>
    %cst_4 = arith.constant 0.000000e+00 : f32
    %6 = vector.broadcast %cst_4 : f32 to vector<128x32xf32>
    %7 = arith.maximumf %5, %6 : vector<128x32xf32>
    %c0_5 = arith.constant 0 : index
    %c0_6 = arith.constant 0 : index
    %c0_7 = arith.constant 0 : index
    %8 = vector.load %arg4[%c0_5, %c0_6, %c0_7] : memref<1x32x32xf32, #tpu.memory_space<vmem>>, vector<1x32x32xf32>
    %9 = vector.shape_cast %8 : vector<1x32x32xf32> to vector<32x32xf32>
    %cst_8 = arith.constant dense<0.000000e+00> : vector<128x32xf32>
    %10 = tpu.matmul %7, %9, %cst_8 {dimension_numbers = #tpu.dot_dimension_numbers<[1], [0], [0], [1], [0, 0, 1, 1], [], []>} : vector<128x32xf32>, vector<32x32xf32>, vector<128x32xf32> -> vector<128x32xf32>
    %cst_9 = arith.constant 0.000000e+00 : f32
    %11 = vector.broadcast %cst_9 : f32 to vector<128x32xf32>
    %12 = arith.maximumf %10, %11 : vector<128x32xf32>
    %c0_10 = arith.constant 0 : index
    %c0_11 = arith.constant 0 : index
    %c0_12 = arith.constant 0 : index
    %13 = vector.load %arg5[%c0_10, %c0_11, %c0_12] : memref<1x32x32xf32, #tpu.memory_space<vmem>>, vector<1x32x32xf32>
    %14 = vector.shape_cast %13 : vector<1x32x32xf32> to vector<32x32xf32>
    %cst_13 = arith.constant dense<0.000000e+00> : vector<128x32xf32>
    %15 = tpu.matmul %12, %14, %cst_13 {dimension_numbers = #tpu.dot_dimension_numbers<[1], [0], [0], [1], [0, 0, 1, 1], [], []>} : vector<128x32xf32>, vector<32x32xf32>, vector<128x32xf32> -> vector<128x32xf32>
    %cst_14 = arith.constant 0.000000e+00 : f32
    %16 = vector.broadcast %cst_14 : f32 to vector<128x32xf32>
    %17 = arith.maximumf %15, %16 : vector<128x32xf32>
    %18 = arith.addf %17, %7 : vector<128x32xf32>
    %c0_15 = arith.constant 0 : index
    %c0_16 = arith.constant 0 : index
    %19 = vector.load %arg9[%c0_15, %c0_16] : memref<2x32xf32, #tpu.memory_space<vmem>>, vector<2x32xf32>
    %c0_17 = arith.constant 0 : index
    %c0_18 = arith.constant 0 : index
    %20 = vector.load %arg7[%c0_17, %c0_18] : memref<2x128xf32, #tpu.memory_space<vmem>>, vector<2x128xf32>
    %cst_19 = arith.constant dense<0.000000e+00> : vector<2x32xf32>
    %21 = tpu.matmul %20, %18, %cst_19 {dimension_numbers = #tpu.dot_dimension_numbers<[1], [0], [0], [1], [0, 0, 1, 1], [], []>} : vector<2x128xf32>, vector<128x32xf32>, vector<2x32xf32> -> vector<2x32xf32>
    %22 = arith.addf %19, %21 : vector<2x32xf32>
    %c0_20 = arith.constant 0 : index
    %c0_21 = arith.constant 0 : index
    %23 = vector.load %arg9[%c0_20, %c0_21] : memref<2x32xf32, #tpu.memory_space<vmem>>, vector<2x32xf32>
    tpu.vector_store %arg9[%c0_20, %c0_21], %22 {strides = array<i32>} : memref<2x32xf32, #tpu.memory_space<vmem>>, vector<2x32xf32>,
    %c1_i32 = arith.constant 1 : i32
    %24 = arith.cmpi eq, %arg1, %c1_i32 : i32
    %25 = arith.extui %24 : i1 to i32
    %c0_i32_22 = arith.constant 0 : i32
    %26 = arith.cmpi ne, %25, %c0_i32_22 : i32
    scf.if %26 {
      %c0_23 = arith.constant 0 : index
      %c0_24 = arith.constant 0 : index
      %27 = vector.load %arg9[%c0_23, %c0_24] : memref<2x32xf32, #tpu.memory_space<vmem>>, vector<2x32xf32>
      %c0_25 = arith.constant 0 : index
      %c0_26 = arith.constant 0 : index
      %28 = vector.load %arg6[%c0_25, %c0_26] : memref<32x128xf32, #tpu.memory_space<vmem>>, vector<32x128xf32>
      %cst_27 = arith.constant dense<0.000000e+00> : vector<2x128xf32>
      %29 = tpu.matmul %27, %28, %cst_27 {dimension_numbers = #tpu.dot_dimension_numbers<[1], [0], [0], [1], [0, 0, 1, 1], [], []>} : vector<2x32xf32>, vector<32x128xf32>, vector<2x128xf32> -> vector<2x128xf32>
      %c0_28 = arith.constant 0 : index
      %c0_29 = arith.constant 0 : index
      %c0_30 = arith.constant 0 : index
      %30 = vector.load %arg8[%c0_28, %c0_29, %c0_30] : memref<1x2x128xf32, #tpu.memory_space<vmem>>, vector<1x2x128xf32>
      %31 = vector.shape_cast %30 : vector<1x2x128xf32> to vector<2x128xf32>
      %32 = vector.shape_cast %29 : vector<2x128xf32> to vector<1x2x128xf32>
      tpu.vector_store %arg8[%c0_28, %c0_29, %c0_30], %32 {strides = array<i32>} : memref<1x2x128xf32, #tpu.memory_space<vmem>>, vector<1x2x128xf32>,
    } else {
    }
    return
  }
  func.func @transform_0(%arg0: i32, %arg1: i32) -> (i32, i32) {
    %c2_i32 = arith.constant 2 : i32
    %0 = arith.muli %arg0, %c2_i32 : i32
    %1 = arith.addi %0, %arg1 : i32
    %c0_i32 = arith.constant 0 : i32
    %c0_i32_0 = arith.constant 0 : i32
    return %1, %c0_i32 : i32, i32
  }
  func.func @transform_1(%arg0: i32, %arg1: i32) -> (i32, i32) {
    %c0_i32 = arith.constant 0 : i32
    %c0_i32_0 = arith.constant 0 : i32
    %c0_i32_1 = arith.constant 0 : i32
    return %c0_i32, %c0_i32_0 : i32, i32
  }
  func.func @transform_2(%arg0: i32, %arg1: i32) -> (i32, i32, i32) {
    %c0_i32 = arith.constant 0 : i32
    %c0_i32_0 = arith.constant 0 : i32
    %c0_i32_1 = arith.constant 0 : i32
    %c0_i32_2 = arith.constant 0 : i32
    return %c0_i32, %c0_i32_0, %c0_i32_1 : i32, i32, i32
  }
  func.func @transform_3(%arg0: i32, %arg1: i32) -> (i32, i32, i32) {
    %c0_i32 = arith.constant 0 : i32
    %c0_i32_0 = arith.constant 0 : i32
    %c0_i32_1 = arith.constant 0 : i32
    %c0_i32_2 = arith.constant 0 : i32
    return %c0_i32, %c0_i32_0, %c0_i32_1 : i32, i32, i32
  }
  func.func @transform_4(%arg0: i32, %arg1: i32) -> (i32, i32) {
    %c0_i32 = arith.constant 0 : i32
    %c0_i32_0 = arith.constant 0 : i32
    %c0_i32_1 = arith.constant 0 : i32
    return %c0_i32, %c0_i32_0 : i32, i32
  }
  func.func @transform_5(%arg0: i32, %arg1: i32) -> (i32, i32) {
    %c2_i32 = arith.constant 2 : i32
    %0 = arith.muli %arg0, %c2_i32 : i32
    %1 = arith.addi %0, %arg1 : i32
    %c0_i32 = arith.constant 0 : i32
    %c0_i32_0 = arith.constant 0 : i32
    return %c0_i32, %1 : i32, i32
  }
  func.func @transform_6(%arg0: i32, %arg1: i32) -> (i32, i32, i32) {
    %c0_i32 = arith.constant 0 : i32
    %c0_i32_0 = arith.constant 0 : i32
    %c0_i32_1 = arith.constant 0 : i32
    return %arg0, %c0_i32, %c0_i32_0 : i32, i32, i32
  }
}

</mosaic_0001>

<bundles_post_ra>
// kernel: tpu_custom_call.1
= control target key start
LH: loop header
LB: loop body
LE: loop exit
PB: predicated region body
PF: predicated region fallthrough
CT: control target
= control target key end

     0   :  { %11 = vsyncpa [#allocation4], 0  ;;  %s1496_s0 = inlined_call_operand.hbm [shape: f32[256,128], index: 0, kind: input, shape index: {}]   ;;  %s1497_s1 = inlined_call_operand.vmem [shape: f32[128,32], index: 1, kind: input, shape index: {}]   ;;  %s1498_s2 = inlined_call_operand.vmem [shape: f32[1,32,32], index: 2, kind: input, shape index: {}]   ;;  %s1499_s3 = inlined_call_operand.vmem [shape: f32[1,32,32], index: 3, kind: input, shape index: {}]   ;;  %s1500_s4 = inlined_call_operand.vmem [shape: f32[32,128], index: 4, kind: input, shape index: {}]   ;;  %s1501_s5 = inlined_call_operand.vmem [shape: f32[2,256], index: 5, kind: input, shape index: {}]   ;;  %s1502_s6 = inlined_call_operand.hbm [shape: f32[1,2,128], index: 6, kind: output, shape index: {}]  }
   0x1   :  { %13 = vsyncpa [#allocation4 + $0x1], 0 }
   0x2   :  { %14 = vsyncpa [#allocation5], 0  ;;  %s1146_s21 = smov 0   ;;  %s1148_s22 = smov 0  }
   0x3   :  { %s1150_s23 = smov 0   ;;  %s1152_s24 = smov 0  }
   0x4   :  { %s1154_s25 = smov 0   ;;  %s1156_s26 = smov 0  }
   0x5 LB: > { %s863_s27 = sadd.s32 4294967295, %s1105_s26   ;;  %s29_s28 = sadd.s32 1, %s1101_s25  ;;  %s1105_s26 = sphi %s1156_s26, %s20_s26   ;;  %s1101_s25 = sphi %s1154_s25, %s1509_s25   ;;  %s1097_s24 = sphi %s1152_s24, %s1508_s24   ;;  %s1093_s23 = sphi %s1150_s23, %s1507_s23   ;;  %s1089_s22 = sphi %s1148_s22, %s1506_s22   ;;  %s1085_s21 = sphi %s1146_s21, %s1505_s21  }
   0x6   : > { %p30_p0 = scmp.ge.s32.totalorder %s29_s28, 2  ;;  %s43_s29 = sadd.s32 1, %s1093_s23 }
   0x7   : > { %p50_p1 = scmp.ne.s32.totalorder %s1093_s23, %s1089_s22  ;;  %p51_p2 = scmp.eq.s32.totalorder %s1105_s26, 0 }
   0x8   : > { %s1511_s28 = smov (%p30_p0, %s29_s28), 0  ;;  %p56_p4 = scmp.ne.s32.totalorder %s1089_s22, %s1085_s21 }
   0x9   : > { %p1182_p3 = por %p51_p2, %p50_p1  ;;  %s40_s7 = ssub.s32 %s1101_s25, %s1511_s28 }
   0xa   : > { %p57_p5 = scmp.eq.s32.totalorder %s863_s27, 0  ;;  %p41_p6 = scmp.eq.s32.totalorder %s40_s7, 0 }
   0xb   : > { %p938_p8 = scmp.lt.s32.totalorder %s1105_s26, 2  ;;  %s232_s10 = sand.u32 1, %s1093_s23  }
   0xc   : > { %p1191_p7 = por %p57_p5, %p56_p4  ;;  %s911_s11 = sshll.u32 %s1101_s25, 7 }
   0xd   : > { %s1197_s9 = scalar_select %p41_p6, %s1093_s23, %s43_s29  }
   0xe   : > { %s866_s12 = sshll.u32 %s232_s10, 7  ;;  %s243_s15 = scalar_lea.hbm %s1496_s0, %s911_s11 }
   0xf   : > { %s244_s16 = sshll.u32 %s243_s15, 4  ;;  %s236_s17 = scalar_lea.vmem [#allocation3], %s866_s12  ;;  %s245_s16 = int_to_ptr.hbm [resolvable:$true] %s244_s16 }
  0x10   : > { %s246_s18 = sshll.u32 %s236_s17, 4  ;;  %p935_p9 = pnand %p938_p8, %p1182_p3  ;;  %s247_s18 = int_to_ptr.vmem [resolvable:$true] %s246_s18 }
  0x11   : > { %p869_p10 = scmp.ge.s32.totalorder %s1105_s26, 1  ;;  %p265_p11 = scmp.lt.s32.totalorder %s1105_s26, 3 }
  0x12   : > { %s233_s19 = scalar_lea.sflag [#allocation4], %s232_s10  ;;  %s1107_s20 = smov 128  }
  0x13   : > { %s1108_s21 = smov 8   ;;  %p266_p12 = pnand %p869_p10, %p265_p11 }
  0x14   : > { %937 = dma.hbm_to_vmem [thread:$0]  (!%p935_p9), %s245_s16, 2048, %s247_s18, %s233_s19, %s1107_s20, %s1107_s20, %s1108_s21  }
  0x15   : > { %269 = sbr.rel (%p266_p12) target bundleno = 888 (0x378), region = 44  ;;  %s271_s29 = sand.u32 (!%p266_p12), 1, %s1089_s22  }
  0x16   : > { %s870_s7 = sshll.u32 (!%p266_p12), %s271_s29, 7  ;;  %s272_s11 = scalar_lea.sflag (!%p266_p12), [#allocation4], %s271_s29 }
  0x17   : > { %s1209_s13 = scalar_lea.vmem (!%p266_p12), [#allocation3], %s870_s7 }
  0x1a   : > { %1076 = dma.done.wait (%p1191_p7), %s272_s11, 2048  }
  0x1b   : > { %1078 = vsyncadd (%p1191_p7), %s272_s11, 4294965248  ;;  %p311_p13 = scmp.lt.s32.totalorder %s1097_s24, 1  ;;  %p872_p0 = scmp.ne.s32.totalorder %s1097_s24, 0 }
  0x1d   : > { %s312_s30 = scalar_select %p311_p13, %s1097_s24, 1 }
  0x1e   : > { %320 = sbr.rel (%p872_p0) target bundleno = 37 (0x25), region = 52 }
  0x1f   : > { %s871_s10 = sshll.u32 %s312_s30, 1 }
  0x20   : > { %s1220_s15 = scalar_lea.vmem %s1501_s5, %s871_s10 }
  0x23   : > { %vm321_vm0 = vcmask 254976   ;;  %v1109_v0 = vmov 0.0  }
  0x24   : > { %322 = vst.msk [vmem:[#allocation2] sm:$0x3] %vm321_vm0, %v1109_v0 }
  0x25 PF: > { %v354_v1 = vld [vmem:[%s1497_s1 + $0x78] sm:$0xff]  ;;  %v353_v2 = vld [vmem:[%s1497_s1 + $0x70] sm:$0xff]  ;;  %v352_v3 = vld [vmem:[%s1497_s1 + $0x68] sm:$0xff]  ;;  %vm440_vm1 = vcmask 261120   ;;  %vm742_vm2 = vcmask 254976   ;;  %p905_p1 = scmp.ne.s32.totalorder %s1097_s24, 1 }
  0x26   : > { %355 = vmatpush.msra.mxu0 %v354_v1  ;;  %912 = vmatpush.msra.mxu3 %v354_v1  ;;  %v351_v4 = vld [vmem:[%s1497_s1 + $0x60] sm:$0xff]  ;;  %v350_v5 = vld [vmem:[%s1497_s1 + $0x58] sm:$0xff]  ;;  %v349_v6 = vld [vmem:[%s1497_s1 + $0x50] sm:$0xff] }
  0x27   : > { %v348_v7 = vld [vmem:[%s1497_s1 + $0x48] sm:$0xff]  ;;  %v347_v8 = vld [vmem:[%s1497_s1 + $0x40] sm:$0xff]  ;;  %v346_v9 = vld [vmem:[%s1497_s1 + $0x38] sm:$0xff] }
  0x28   : > { %356 = vmatpush.msra.mxu0 %v353_v2  ;;  %913 = vmatpush.msra.mxu3 %v353_v2  ;;  %v345_v10 = vld [vmem:[%s1497_s1 + $0x30] sm:$0xff]  ;;  %v344_v11 = vld [vmem:[%s1497_s1 + $0x28] sm:$0xff]  ;;  %v343_v12 = vld [vmem:[%s1497_s1 + $0x20] sm:$0xff] }
  0x29   : > { %v342_v13 = vld [vmem:[%s1497_s1 + $0x18] sm:$0xff]  ;;  %v341_v14 = vld [vmem:[%s1497_s1 + $0x10] sm:$0xff]  ;;  %v340_v15 = vld [vmem:[%s1497_s1 + $0x8] sm:$0xff] }
  0x2a   : > { %357 = vmatpush.msra.mxu0 %v352_v3  ;;  %914 = vmatpush.msra.mxu3 %v352_v3  ;;  %v339_v16 = vld [vmem:[%s1497_s1] sm:$0xff]  ;;  %v324_v18 = vld [vmem:[%s1209_s13 + $0x8] sm:$0xff]  ;;  %v325_v19 = vld [vmem:[%s1209_s13 + $0x10] sm:$0xff] }
  0x2b   : > { %v323_v17 = vld [vmem:[%s1209_s13] sm:$0xff]  ;;  %v326_v20 = vld [vmem:[%s1209_s13 + $0x18] sm:$0xff]  ;;  %v328_v22 = vld [vmem:[%s1209_s13 + $0x28] sm:$0xff] }
  0x2c   : > { %358 = vmatpush.msra.mxu0 %v351_v4  ;;  %915 = vmatpush.msra.mxu3 %v351_v4  ;;  %v327_v21 = vld [vmem:[%s1209_s13 + $0x20] sm:$0xff]  ;;  %v329_v23 = vld [vmem:[%s1209_s13 + $0x30] sm:$0xff]  ;;  %v334_v24 = vld [vmem:[%s1209_s13 + $0x58] sm:$0xff] }
  0x2d   : > { %v439_v25 = vld [vmem:[%s1498_s2 + $0x18] sm:$0xff]  ;;  %v438_v26 = vld [vmem:[%s1498_s2 + $0x10] sm:$0xff]  ;;  %v335_v28 = vld [vmem:[%s1209_s13 + $0x60] sm:$0xff] }
  0x2e   : > { %359 = vmatpush.msra.mxu0 %v350_v5  ;;  %916 = vmatpush.msra.mxu3 %v350_v5  ;;  %v330_v27 = vld [vmem:[%s1209_s13 + $0x38] sm:$0xff]  ;;  %v331_v29 = vld [vmem:[%s1209_s13 + $0x40] sm:$0xff]  ;;  %v336_v30 = vld [vmem:[%s1209_s13 + $0x68] sm:$0xff] }
  0x2f   : > { %501 = vmatpush.msra.mxu1 %v439_v25  ;;  %v332_v31 = vld [vmem:[%s1209_s13 + $0x48] sm:$0xff]  ;;  %v337_v32 = vld [vmem:[%s1209_s13 + $0x70] sm:$0xff]  ;;  %v338_v34 = vld [vmem:[%s1209_s13 + $0x78] sm:$0xff] }
  0x30   : > { %360 = vmatpush.msra.mxu0 %v349_v6  ;;  %917 = vmatpush.msra.mxu3 %v349_v6  ;;  %v333_v33 = vld [vmem:[%s1209_s13 + $0x50] sm:$0xff]  ;;  %v437_v35 = vld [vmem:[%s1498_s2 + $0x8] sm:$0xff]  ;;  %v436_v36 = vld [vmem:[%s1498_s2] sm:$0xff] }
  0x31   : > { %502 = vmatpush.msra.mxu1 %v438_v26  ;;  %v573_v62 = vld [vmem:[%s1499_s3 + $0x18] sm:$0xff]  ;;  %v572_v63 = vld [vmem:[%s1499_s3 + $0x10] sm:$0xff]  ;;  %v571_v1 = vld [vmem:[%s1499_s3 + $0x8] sm:$0xff] }
  0x32   : > { %361 = vmatpush.msra.mxu0 %v348_v7  ;;  %918 = vmatpush.msra.mxu3 %v348_v7  ;;  %v570_v3 = vld [vmem:[%s1499_s3] sm:$0xff] }
  0x33   : > { %503 = vmatpush.msra.mxu1 %v437_v35  ;;  %634 = vmatpush.msra.mxu2 %v573_v62 }
  0x34   : > { %362 = vmatpush.msra.mxu0 %v347_v8  ;;  %919 = vmatpush.msra.mxu3 %v347_v8 }
  0x35   : > { %504 = vmatpush.msra.mxu1 %v436_v36  ;;  %635 = vmatpush.msra.mxu2 %v572_v63 }
  0x36   : > { %363 = vmatpush.msra.mxu0 %v346_v9  ;;  %920 = vmatpush.msra.mxu3 %v346_v9 }
  0x37   : > { %636 = vmatpush.msra.mxu2 %v571_v1 }
  0x38   : > { %364 = vmatpush.msra.mxu0 %v345_v10  ;;  %921 = vmatpush.msra.mxu3 %v345_v10 }
  0x39   : > { %637 = vmatpush.msra.mxu2 %v570_v3 }
  0x3a   : > { %365 = vmatpush.msra.mxu0 %v344_v11  ;;  %922 = vmatpush.msra.mxu3 %v344_v11 }
  0x3c   : > { %366 = vmatpush.msra.mxu0 %v343_v12  ;;  %923 = vmatpush.msra.mxu3 %v343_v12 }
  0x3e   : > { %367 = vmatpush.msra.mxu0 %v342_v13  ;;  %924 = vmatpush.msra.mxu3 %v342_v13 }
  0x40   : > { %368 = vmatpush.msra.mxu0 %v341_v14  ;;  %925 = vmatpush.msra.mxu3 %v341_v14 }
  0x42   : > { %369 = vmatpush.msra.mxu0 %v340_v15  ;;  %926 = vmatpush.msra.mxu3 %v340_v15 }
  0x44   : > { %370 = vmatpush.msra.mxu0 %v339_v16  ;;  %927 = vmatpush.msra.mxu3 %v339_v16 }
  0x45   : > { %371 = vmatmul.f32.vlgmr.msra.gmra.mxu0 %v323_v17  ;;  %404 = vmatmul.f32.vlgmr.msra.gmra.mxu3 %v334_v24 }
  0x4d   : > { %374 = vmatmul.f32.gmra.mxu0 %v324_v18  ;;  %407 = vmatmul.f32.gmra.mxu3 %v335_v28 }
  0x55   : > { %377 = vmatmul.f32.gmra.mxu0 %v325_v19  ;;  %410 = vmatmul.f32.gmra.mxu3 %v336_v30 }
  0x5d   : > { %380 = vmatmul.f32.gmra.mxu0 %v326_v20  ;;  %413 = vmatmul.f32.gmra.mxu3 %v337_v32 }
  0x65   : > { %383 = vmatmul.f32.gmra.mxu0 %v327_v21  ;;  %416 = vmatmul.f32.gmra.mxu3 %v338_v34 }
  0x6d   : > { %386 = vmatmul.f32.gmra.mxu0 %v328_v22 }
  0x75   : > { %389 = vmatmul.f32.gmra.mxu0 %v329_v23 }
  0x7d   : > { %392 = vmatmul.f32.gmra.mxu0 %v330_v27 }
  0x85   : > { %395 = vmatmul.f32.gmra.mxu0 %v331_v29 }
  0x8d   : > { %398 = vmatmul.f32.gmra.mxu0 %v332_v31 }
  0x95   : > { %401 = vmatmul.f32.gmra.mxu0 %v333_v33 }
  0xc2   : > { %v1299_v37 = vpop.f32.mrf.mxu0 }
  0xc3   : > { %v420_v38 = vmax.f32 %v1299_v37, 0.0 }
  0xc5   : > { %873 = vmatmul.msk.f32.vlgmr.msra.gmra.mxu1 %vm440_vm1, %v420_v38 }
  0xc8   : > { %v1359_v57 = vpop.f32.mrf.mxu3 }
  0xc9   : > { %v431_v61 = vmax.f32 %v1359_v57, 0.0 }
  0xca   : > { %v1305_v39 = vpop.f32.mrf.mxu0 }
  0xcb   : > { %v421_v40 = vmax.f32 %v1305_v39, 0.0 }
  0xcd   : > { %874 = vmatmul.msk.f32.gmra.mxu1 %vm440_vm1, %v421_v40 }
  0xd0   : > { %v1367_v60 = vpop.f32.mrf.mxu3 }
  0xd1   : > { %v432_v0 = vmax.f32 %v1367_v60, 0.0 }
  0xd2   : > { %v1311_v41 = vpop.f32.mrf.mxu0 }
  0xd3   : > { %v422_v42 = vmax.f32 %v1311_v41, 0.0 }
  0xd5   : > { %875 = vmatmul.msk.f32.gmra.mxu1 %vm440_vm1, %v422_v42 }
  0xd8   : > { %v1383_v2 = vpop.f32.mrf.mxu3 }
  0xd9   : > { %v433_v4 = vmax.f32 %v1383_v2, 0.0 }
  0xda   : > { %v1317_v43 = vpop.f32.mrf.mxu0 }
  0xdb   : > { %v423_v44 = vmax.f32 %v1317_v43, 0.0 }
  0xdd   : > { %876 = vmatmul.msk.f32.gmra.mxu1 %vm440_vm1, %v423_v44 }
  0xe0   : > { %v1392_v5 = vpop.f32.mrf.mxu3 }
  0xe1   : > { %v434_v6 = vmax.f32 %v1392_v5, 0.0 }
  0xe2   : > { %v1323_v45 = vpop.f32.mrf.mxu0 }
  0xe3   : > { %v424_v46 = vmax.f32 %v1323_v45, 0.0 }
  0xe5   : > { %877 = vmatmul.msk.f32.gmra.mxu1 %vm440_vm1, %v424_v46 }
  0xe8   : > { %v1401_v7 = vpop.f32.mrf.mxu3 }
  0xe9   : > { %v435_v8 = vmax.f32 %v1401_v7, 0.0 }
  0xea   : > { %v1329_v47 = vpop.f32.mrf.mxu0 }
  0xeb   : > { %v425_v48 = vmax.f32 %v1329_v47, 0.0 }
  0xed   : > { %878 = vmatmul.msk.f32.gmra.mxu1 %vm440_vm1, %v425_v48 }
  0xf2   : > { %v1335_v49 = vpop.f32.mrf.mxu0 }
  0xf3   : > { %v426_v50 = vmax.f32 %v1335_v49, 0.0 }
  0xf5   : > { %879 = vmatmul.msk.f32.gmra.mxu1 %vm440_vm1, %v426_v50 }
  0xfa   : > { %v1341_v51 = vpop.f32.mrf.mxu0 }
  0xfb   : > { %v427_v52 = vmax.f32 %v1341_v51, 0.0 }
  0xfd   : > { %880 = vmatmul.msk.f32.gmra.mxu1 %vm440_vm1, %v427_v52 }
 0x102   : > { %v1347_v53 = vpop.f32.mrf.mxu0 }
 0x103   : > { %v428_v54 = vmax.f32 %v1347_v53, 0.0 }
 0x105   : > { %881 = vmatmul.msk.f32.gmra.mxu1 %vm440_vm1, %v428_v54 }
 0x10a   : > { %v1353_v55 = vpop.f32.mrf.mxu0 }
 0x10b   : > { %v429_v56 = vmax.f32 %v1353_v55, 0.0 }
 0x10d   : > { %882 = vmatmul.msk.f32.gmra.mxu1 %vm440_vm1, %v429_v56 }
 0x112   : > { %v1361_v58 = vpop.f32.mrf.mxu0 }
 0x113   : > { %v430_v59 = vmax.f32 %v1361_v58, 0.0 }
 0x115   : > { %883 = vmatmul.msk.f32.gmra.mxu1 %vm440_vm1, %v430_v59 }
 0x11d   : > { %884 = vmatmul.msk.f32.gmra.mxu1 %vm440_vm1, %v431_v61 }
 0x125   : > { %885 = vmatmul.msk.f32.gmra.mxu1 %vm440_vm1, %v432_v0 }
 0x12d   : > { %886 = vmatmul.msk.f32.gmra.mxu1 %vm440_vm1, %v433_v4 }
 0x135   : > { %887 = vmatmul.msk.f32.gmra.mxu1 %vm440_vm1, %v434_v6 }
 0x13d   : > { %888 = vmatmul.msk.f32.gmra.mxu1 %vm440_vm1, %v435_v8 }
 0x142   : > { %v506_v9 = vpop.f32.mrf.mxu1 }
 0x143   : > { %v554_v10 = vmax.f32 %v506_v9, 0.0 }
 0x145   : > { %889 = vmatmul.msk.f32.vlgmr.msra.gmra.mxu2 %vm440_vm1, %v554_v10 }
 0x14a   : > { %v509_v11 = vpop.f32.mrf.mxu1 }
 0x14b   : > { %v555_v12 = vmax.f32 %v509_v11, 0.0 }
 0x14d   : > { %890 = vmatmul.msk.f32.gmra.mxu2 %vm440_vm1, %v555_v12 }
 0x152   : > { %v512_v13 = vpop.f32.mrf.mxu1 }
 0x153   : > { %v556_v14 = vmax.f32 %v512_v13, 0.0 }
 0x155   : > { %891 = vmatmul.msk.f32.gmra.mxu2 %vm440_vm1, %v556_v14 }
 0x15a   : > { %v515_v15 = vpop.f32.mrf.mxu1 }
 0x15b   : > { %v557_v16 = vmax.f32 %v515_v15, 0.0 }
 0x15d   : > { %892 = vmatmul.msk.f32.gmra.mxu2 %vm440_vm1, %v557_v16 }
 0x162   : > { %v518_v17 = vpop.f32.mrf.mxu1 }
 0x163   : > { %v558_v18 = vmax.f32 %v518_v17, 0.0 }
 0x165   : > { %893 = vmatmul.msk.f32.gmra.mxu2 %vm440_vm1, %v558_v18 }
 0x16a   : > { %v521_v19 = vpop.f32.mrf.mxu1 }
 0x16b   : > { %v559_v20 = vmax.f32 %v521_v19, 0.0 }
 0x16d   : > { %894 = vmatmul.msk.f32.gmra.mxu2 %vm440_vm1, %v559_v20 }
 0x172   : > { %v524_v21 = vpop.f32.mrf.mxu1 }
 0x173   : > { %v560_v22 = vmax.f32 %v524_v21, 0.0 }
 0x175   : > { %895 = vmatmul.msk.f32.gmra.mxu2 %vm440_vm1, %v560_v22 }
 0x17a   : > { %v527_v23 = vpop.f32.mrf.mxu1 }
 0x17b   : > { %v561_v24 = vmax.f32 %v527_v23, 0.0 }
 0x17d   : > { %896 = vmatmul.msk.f32.gmra.mxu2 %vm440_vm1, %v561_v24 }
 0x182   : > { %v530_v25 = vpop.f32.mrf.mxu1 }
 0x183   : > { %v562_v26 = vmax.f32 %v530_v25, 0.0 }
 0x185   : > { %897 = vmatmul.msk.f32.gmra.mxu2 %vm440_vm1, %v562_v26 }
 0x18a   : > { %v533_v27 = vpop.f32.mrf.mxu1 }
 0x18b   : > { %v563_v28 = vmax.f32 %v533_v27, 0.0 }
 0x18d   : > { %898 = vmatmul.msk.f32.gmra.mxu2 %vm440_vm1, %v563_v28 }
 0x192   : > { %v536_v29 = vpop.f32.mrf.mxu1 }
 0x193   : > { %v564_v30 = vmax.f32 %v536_v29, 0.0 }
 0x195   : > { %899 = vmatmul.msk.f32.gmra.mxu2 %vm440_vm1, %v564_v30 }
 0x19a   : > { %v539_v31 = vpop.f32.mrf.mxu1 }
 0x19b   : > { %v565_v32 = vmax.f32 %v539_v31, 0.0 }
 0x19d   : > { %900 = vmatmul.msk.f32.gmra.mxu2 %vm440_vm1, %v565_v32 }
 0x1a2   : > { %v542_v33 = vpop.f32.mrf.mxu1 }
 0x1a3   : > { %v566_v34 = vmax.f32 %v542_v33, 0.0 }
 0x1a5   : > { %901 = vmatmul.msk.f32.gmra.mxu2 %vm440_vm1, %v566_v34 }
 0x1aa   : > { %v545_v35 = vpop.f32.mrf.mxu1 }
 0x1ab   : > { %v567_v36 = vmax.f32 %v545_v35, 0.0 }
 0x1ad   : > { %902 = vmatmul.msk.f32.gmra.mxu2 %vm440_vm1, %v567_v36 }
 0x1b2   : > { %v548_v62 = vpop.f32.mrf.mxu1 }
 0x1b3   : > { %v568_v63 = vmax.f32 %v548_v62, 0.0 }
 0x1b5   : > { %903 = vmatmul.msk.f32.gmra.mxu2 %vm440_vm1, %v568_v63 }
 0x1ba   : > { %v551_v1 = vpop.f32.mrf.mxu1 }
 0x1bb   : > { %v569_v3 = vmax.f32 %v551_v1, 0.0 }
 0x1bd   : > { %904 = vmatmul.msk.f32.gmra.mxu2 %vm440_vm1, %v569_v3 }
 0x1c8   : > { %v1423_v9 = vpop.f32.mrf.mxu2 }
 0x1d0   : > { %v642_v10 = vpop.f32.mrf.mxu2 }
 0x1d8   : > { %v645_v11 = vpop.f32.mrf.mxu2 }
 0x1e0   : > { %v648_v12 = vpop.f32.mrf.mxu2 }
 0x1e8   : > { %v651_v13 = vpop.f32.mrf.mxu2 }
 0x1f0   : > { %v654_v14 = vpop.f32.mrf.mxu2 }
 0x1f8   : > { %v657_v15 = vpop.f32.mrf.mxu2 }
 0x200   : > { %v660_v16 = vpop.f32.mrf.mxu2 }
 0x208   : > { %v663_v17 = vpop.f32.mrf.mxu2 }
 0x210   : > { %v666_v18 = vpop.f32.mrf.mxu2 }
 0x211   : > { %v696_v35 = vmax.f32 %v666_v18, 0.0 }
 0x213   : > { %v712_v2 = vadd.f32 %v696_v35, %v429_v56  ;;  %v689_v56 = vmax.f32 %v645_v11, 0.0 }
 0x215   : > { %v705_v49 = vadd.f32 %v689_v56, %v422_v42 }
 0x218   : > { %v669_v19 = vpop.f32.mrf.mxu2 }
 0x219   : > { %v697_v33 = vmax.f32 %v669_v19, 0.0 }
 0x21b   : > { %v713_v5 = vadd.f32 %v697_v33, %v430_v59  ;;  %v690_v59 = vmax.f32 %v648_v12, 0.0 }
 0x21d   : > { %v706_v51 = vadd.f32 %v690_v59, %v423_v44 }
 0x220   : > { %v672_v20 = vpop.f32.mrf.mxu2 }
 0x221   : > { %v698_v31 = vmax.f32 %v672_v20, 0.0 }
 0x223   : > { %v714_v7 = vadd.f32 %v698_v31, %v431_v61  ;;  %v691_v61 = vmax.f32 %v651_v13, 0.0 }
 0x225   : > { %v707_v53 = vadd.f32 %v691_v61, %v424_v46  ;;  %v720_v46 = vld [vmem:[%s1220_s15] sm:$0x3] }
 0x228   : > { %v675_v21 = vpop.f32.mrf.mxu2 }
 0x229   : > { %v699_v29 = vmax.f32 %v675_v21, 0.0 }
 0x22b   : > { %v715_v34 = vadd.f32 %v699_v29, %v432_v0  ;;  %v692_v0 = vmax.f32 %v654_v14, 0.0 }
 0x22d   : > { %v708_v55 = vadd.f32 %v692_v0, %v425_v48  ;;  %v719_v48 = vld [vmem:[#allocation2] sm:$0x3] }
 0x230   : > { %v678_v22 = vpop.f32.mrf.mxu2 }
 0x231   : > { %v700_v27 = vmax.f32 %v678_v22, 0.0 }
 0x233   : > { %v716_v32 = vadd.f32 %v700_v27, %v433_v4  ;;  %v693_v4 = vmax.f32 %v657_v15, 0.0 }
 0x235   : > { %v709_v58 = vadd.f32 %v693_v4, %v426_v50 }
 0x238   : > { %v681_v23 = vpop.f32.mrf.mxu2 }
 0x239   : > { %v701_v25 = vmax.f32 %v681_v23, 0.0 }
 0x23b   : > { %v717_v30 = vadd.f32 %v701_v25, %v434_v6  ;;  %v694_v6 = vmax.f32 %v660_v16, 0.0 }
 0x23d   : > { %v710_v57 = vadd.f32 %v694_v6, %v427_v52  ;;  %v687_v52 = vmax.f32 %v1423_v9, 0.0 }
 0x23f   : > { %v703_v45 = vadd.f32 %v687_v52, %v420_v38 }
 0x240   : > { %v684_v24 = vpop.f32.mrf.mxu2 }
 0x241   : > { %v702_v26 = vmax.f32 %v684_v24, 0.0 }
 0x243   : > { %v718_v28 = vadd.f32 %v702_v26, %v435_v8  ;;  %v695_v8 = vmax.f32 %v663_v17, 0.0 }
 0x245   : > { %721 = vmatpush.msrb.mxu3 %v718_v28  ;;  %v711_v60 = vadd.f32 %v695_v8, %v428_v54  ;;  %v688_v54 = vmax.f32 %v642_v10, 0.0 }
 0x247   : > { %722 = vmatpush.msrb.mxu3 %v717_v30  ;;  %v704_v47 = vadd.f32 %v688_v54, %v421_v40 }
 0x249   : > { %723 = vmatpush.msrb.mxu3 %v716_v32 }
 0x24b   : > { %724 = vmatpush.msrb.mxu3 %v715_v34 }
 0x24d   : > { %725 = vmatpush.msrb.mxu3 %v714_v7 }
 0x24f   : > { %726 = vmatpush.msrb.mxu3 %v713_v5 }
 0x251   : > { %727 = vmatpush.msrb.mxu3 %v712_v2 }
 0x253   : > { %728 = vmatpush.msrb.mxu3 %v711_v60 }
 0x255   : > { %729 = vmatpush.msrb.mxu3 %v710_v57 }
 0x257   : > { %730 = vmatpush.msrb.mxu3 %v709_v58 }
 0x259   : > { %731 = vmatpush.msrb.mxu3 %v708_v55 }
 0x25b   : > { %732 = vmatpush.msrb.mxu3 %v707_v53 }
 0x25d   : > { %733 = vmatpush.msrb.mxu3 %v706_v51 }
 0x25f   : > { %734 = vmatpush.msrb.mxu3 %v705_v49 }
 0x261   : > { %735 = vmatpush.msrb.mxu3 %v704_v47 }
 0x263   : > { %736 = vmatpush.msrb.mxu3 %v703_v45 }
 0x264   : > { %737 = vmatmul.f32.vlgmr.msrb.gmra.mxu3 %v720_v46 }
 0x2e6   : > { %747 = sbr.rel (%p905_p1) target bundleno = 882 (0x372), region = 56 }
 0x2e7   : > { %v738_v43 = vpop.f32.mrf.mxu3 }
 0x2e8   : > { %v741_v44 = vadd.f32 %v738_v43, %v719_v48 }
 0x2ea   : > { %743 = vst.msk [vmem:[#allocation2] sm:$0x3] %vm742_vm2, %v741_v44 }
 0x2eb   : > { %v752_v39 = vld [vmem:[%s1500_s4 + $0x18] sm:$0xff]  ;;  %v751_v37 = vld [vmem:[%s1500_s4 + $0x10] sm:$0xff]  ;;  %v750_v38 = vld [vmem:[%s1500_s4 + $0x8] sm:$0xff] }
 0x2ec   : > { %768 = vmatpush.msra.mxu0 %v752_v39  ;;  %v749_v40 = vld [vmem:[%s1500_s4] sm:$0xff] }
 0x2ee   : > { %769 = vmatpush.msra.mxu0 %v751_v37 }
 0x2f0   : > { %770 = vmatpush.msra.mxu0 %v750_v38 }
 0x2f1   : > { %v748_v41 = vld [vmem:[#allocation2] sm:$0x3] }
 0x2f2   : > { %771 = vmatpush.msra.mxu0 %v749_v40 }
 0x2f3   : > { %906 = vmatmul.msk.f32.vlgmr.msra.gmra.mxu0 %vm440_vm1, %v748_v41 }
 0x370   : > { %v773_v42 = vpop.f32.mrf.mxu0 }
 0x371   : > { %776 = vst [vmem:[#allocation6] sm:$0x3] %v773_v42 }
 0x372 PF: > { %p939_p2 = scmp.eq.s32.totalorder %s863_s27, 1  ;;  %s787_s12 = sshll.u32 %s1502_s6, 4  ;;  %s788_s12 = int_to_ptr.hbm [resolvable:$true] %s787_s12 }
 0x373   : > { %s1110_s14 = smov [#allocation6]  }
 0x374   : > { %s785_s16 = sshll.u32 %s1110_s14, 4  ;;  %s786_s16 = int_to_ptr.vmem [resolvable:$true] %s785_s16 }
 0x375   : > { %931 = dma.vmem_to_hbm [thread:$0]  (%p939_p2), %s786_s16, 32, %s788_s12, [#allocation5]  }
 0x376   : > { %1080 = dma.done.wait (%p939_p2), [#allocation5], 32  }
 0x377   : > { %1082 = vsyncadd (%p939_p2), [#allocation5], 4294967264 }
 0x378 PF: > { %s20_s26 = sadd.s32 1, %s1105_s26   ;;  %s1505_s21 = smov %s1089_s22 }
 0x379   : > { %p17_p3 = scmp.ge.s32.totalorder %s20_s26, 4   ;;  %s1506_s22 = smov %s1093_s23 }
 0x37a   : > { %s1507_s23 = smov %s1197_s9  ;;  %s1508_s24 = smov %s1101_s25 }
 0x37b   : > { %s1509_s25 = smov %s1511_s28  ;;  %19 = sbr.rel (!%p17_p3) target bundleno = 5 (0x5), region = 93 }
 0x380   :  { %801 = vsyncpa [#allocation4], 1 }
 0x381   :  { %803 = vsyncpa [#allocation4 + $0x1], 1 }
 0x382   :  { %804 = vsyncpa [#allocation5], 1 }
 0x383   :  { %806 = vsyncpa [#allocation5 + $0x1], 1 }

</bundles_post_ra>
